<compile_context>
chip_gen: v5e
topology: v5e:2x2
jax: 0.10.0
libtpu: 0.0.40
codegen_flags: <defaults>
</compile_context>

<pallas_src>
import functools

import jax
import jax.numpy as jnp
from jax.experimental import pallas as pl
from jax.experimental.pallas import tpu as pltpu


def _pbn_kernel(x_ref, w1_ref, b1_ref, s2_ref, t2_ref, wc_ref, bc_ref,
                feat_ref, bn_ref, logits_ref,
                sum_acc, max_acc, *, inv_hw, neg_slope):
    hw_i = pl.program_id(1)

    # Single pass over the x tile: one load feeds both the sum and the max.
    x = x_ref[...].astype(jnp.float32)            # (Nt, C, HWt)
    tile_sum = jnp.sum(x, axis=-1)                # (Nt, C)
    tile_max = jnp.max(x, axis=-1)                # (Nt, C)

    @pl.when(hw_i == 0)
    def _():
        sum_acc[...] = tile_sum
        max_acc[...] = tile_max

    @pl.when(hw_i > 0)
    def _():
        sum_acc[...] = sum_acc[...] + tile_sum
        max_acc[...] = jnp.maximum(max_acc[...], tile_max)

    # Epilogue: negligible FLOPs, gated to the final reduction step.
    @pl.when(hw_i == pl.num_programs(1) - 1)
    def _():
        pooled = sum_acc[...] * inv_hw + max_acc[...]          # avg-pool + max-pool
        # 1x1 conv (+ folded BatchNorm2d eval affine) as a matmul.
        y = jnp.dot(pooled, w1_ref[...], preferred_element_type=jnp.float32)
        y = y + b1_ref[...]
        feat = jnp.where(y >= 0.0, y, neg_slope * y)           # LeakyReLU(0.1)
        feat_ref[...] = feat                                   # x2_2
        bn = feat * s2_ref[...] + t2_ref[...]                  # BatchNorm1d (eval)
        bn_ref[...] = bn                                       # x2_3
        logits = jnp.dot(bn, wc_ref[...], preferred_element_type=jnp.float32)
        logits_ref[...] = logits + bc_ref[...]                 # x2_4 (lane-padded)


def _choose_tiles(N, C, HW, itemsize, target_bytes=2 * 1024 * 1024):
    """Pick (n_tile, hw_tile) so the x block is lane-dense and ~<= 2 MiB."""
    # Output blocks are (n_tile, R): n_tile must be a multiple of 8 or the full N.
    n_t = 8 if (N % 8 == 0 and N > 8) else N
    if HW % 128 == 0:
        hw_t = 128
        while (hw_t * 2 <= HW and HW % (hw_t * 2) == 0
               and n_t * C * (hw_t * 2) * itemsize <= target_bytes):
            hw_t *= 2
    else:
        hw_t = HW          # fall back to a single (full) HW step
    return n_t, hw_t


def pbn_modify_forward(x_nchw, params, *, n_tile=None, hw_tile=None):
    """x_nchw: (N, C, H, W). Returns (x2_2, x2_3, x2_4).

    The kernel accumulates in f32; callers may pass bf16 x to halve HBM traffic.
    """
    N, C, H, W = x_nchw.shape
    HW = H * W
    # NCHW -> (N, C, H*W) is a pure view (no data movement); HW is the lane axis.
    x_flat = x_nchw.reshape(N, C, HW)

    R = params["conv_w"].shape[0]
    num_classes = params["cls_w"].shape[0]
    eps = 1e-5

    # ---- parameter folding (tiny, done once in XLA outside the kernel) ----
    # BatchNorm2d eval affine folded into the 1x1 conv weight/bias.
    s1 = params["bn1_gamma"] * jax.lax.rsqrt(params["bn1_var"] + eps)       # (R,)
    t1 = params["bn1_beta"] - params["bn1_mean"] * s1
    w1 = (jnp.transpose(params["conv_w"].reshape(R, C)) * s1[None, :]
          ).astype(jnp.float32)                                             # (C, R)
    b1 = (params["conv_b"] * s1 + t1).reshape(1, R).astype(jnp.float32)

    # BatchNorm1d eval affine (applied after the nonlinearity; cannot be folded).
    s2v = params["bn2_gamma"] * jax.lax.rsqrt(params["bn2_var"] + eps)
    t2v = params["bn2_beta"] - params["bn2_mean"] * s2v
    s2 = s2v.reshape(1, R).astype(jnp.float32)
    t2 = t2v.reshape(1, R).astype(jnp.float32)

    # Classifier padded to a lane-dense (multiple-of-128) output width.
    nc_pad = max(128, ((num_classes + 127) // 128) * 128)
    wc = jnp.zeros((R, nc_pad), jnp.float32).at[:, :num_classes].set(
        jnp.transpose(params["cls_w"]).astype(jnp.float32))
    bc = jnp.zeros((1, nc_pad), jnp.float32).at[:, :num_classes].set(
        params["cls_b"].astype(jnp.float32)[None, :])

    # ---- tiling ----
    itemsize = jnp.dtype(x_flat.dtype).itemsize
    auto_n, auto_hw = _choose_tiles(N, C, HW, itemsize)
    n_t = auto_n if n_tile is None else n_tile
    hw_t = auto_hw if hw_tile is None else hw_tile
    assert N % n_t == 0, "n_tile must divide N"
    assert HW % hw_t == 0, "hw_tile must divide H*W"
    assert hw_t == HW or hw_t % 128 == 0, "hw_tile must be a multiple of 128 or H*W"
    assert n_t == N or n_t % 8 == 0, "n_tile must be a multiple of 8 or N"

    grid = (N // n_t, HW // hw_t)
    inv_hw = 1.0 / float(HW)
    kernel = functools.partial(_pbn_kernel, inv_hw=inv_hw, neg_slope=0.1)

    const = lambda n, h: (0, 0)          # params: fetched once, VMEM-resident
    in_specs = [
        pl.BlockSpec((n_t, C, hw_t), lambda n, h: (n, 0, h)),   # x (pipelined)
        pl.BlockSpec((C, R), const),                            # folded conv W
        pl.BlockSpec((1, R), const),                            # folded conv b
        pl.BlockSpec((1, R), const),                            # BN1d scale
        pl.BlockSpec((1, R), const),                            # BN1d shift
        pl.BlockSpec((R, nc_pad), const),                       # classifier W
        pl.BlockSpec((1, nc_pad), const),                       # classifier b
    ]
    out_specs = (
        pl.BlockSpec((n_t, R), lambda n, h: (n, 0)),
        pl.BlockSpec((n_t, R), lambda n, h: (n, 0)),
        pl.BlockSpec((n_t, nc_pad), lambda n, h: (n, 0)),
    )
    out_shapes = (
        jax.ShapeDtypeStruct((N, R), jnp.float32),               # x2_2
        jax.ShapeDtypeStruct((N, R), jnp.float32),               # x2_3
        jax.ShapeDtypeStruct((N, nc_pad), jnp.float32),          # x2_4 (padded)
    )

    feat, bn, logits_p = pl.pallas_call(
        kernel,
        out_shape=out_shapes,
        grid_spec=pltpu.PrefetchScalarGridSpec(
            num_scalar_prefetch=0,
            grid=grid,
            in_specs=in_specs,
            out_specs=out_specs,
            scratch_shapes=[pltpu.VMEM((n_t, C), jnp.float32),   # running sum
                            pltpu.VMEM((n_t, C), jnp.float32)],  # running max
        ),
        compiler_params=pltpu.CompilerParams(
            dimension_semantics=("parallel", "arbitrary"),
            vmem_limit_bytes=32 * 1024 * 1024),
    )(x_flat, w1, b1, s2, t2, wc, bc)

    logits = logits_p[:, :num_classes] if nc_pad != num_classes else logits_p
    return feat, bn, logits


def init_params(key, input_dim, num_classes, num_reduction):
    k_conv, k_bn1g, k_cls = jax.random.split(key, 3)
    # Conv2d kaiming_normal fan_in (a=0 -> gain sqrt(2)), bias=0
    fan_in = input_dim
    conv_w = jax.random.normal(k_conv, (num_reduction, input_dim),
                               dtype=jnp.float32) * jnp.sqrt(2.0 / fan_in)
    conv_b = jnp.zeros((num_reduction,), jnp.float32)
    # BatchNorm2d: gamma ~ N(1, 0.02), beta = 0; running stats at init
    bn1_gamma = 1.0 + 0.02 * jax.random.normal(k_bn1g, (num_reduction,), jnp.float32)
    bn1_beta = jnp.zeros((num_reduction,), jnp.float32)
    bn1_mean = jnp.zeros((num_reduction,), jnp.float32)
    bn1_var = jnp.ones((num_reduction,), jnp.float32)
    # BatchNorm1d (default init): gamma = 1, beta = 0
    bn2_gamma = jnp.ones((num_reduction,), jnp.float32)
    bn2_beta = jnp.zeros((num_reduction,), jnp.float32)
    bn2_mean = jnp.zeros((num_reduction,), jnp.float32)
    bn2_var = jnp.ones((num_reduction,), jnp.float32)
    # classifier: weight ~ N(0, 0.001), bias = 0
    cls_w = 0.001 * jax.random.normal(k_cls, (num_classes, num_reduction), jnp.float32)
    cls_b = jnp.zeros((num_classes,), jnp.float32)
    return dict(conv_w=conv_w, conv_b=conv_b,
                bn1_gamma=bn1_gamma, bn1_beta=bn1_beta,
                bn1_mean=bn1_mean, bn1_var=bn1_var,
                bn2_gamma=bn2_gamma, bn2_beta=bn2_beta,
                bn2_mean=bn2_mean, bn2_var=bn2_var,
                cls_w=cls_w, cls_b=cls_b)


def reference_forward(x_nchw, params):
    """Pure-JAX reference for sanity checking."""
    N, C, H, W = x_nchw.shape
    eps = 1e-5
    xf = x_nchw.reshape(N, C, H * W).astype(jnp.float32)
    pooled = jnp.mean(xf, axis=-1) + jnp.max(xf, axis=-1)
    y = pooled @ params["conv_w"].T + params["conv_b"]
    y = (y - params["bn1_mean"]) / jnp.sqrt(params["bn1_var"] + eps) \
        * params["bn1_gamma"] + params["bn1_beta"]
    feat = jnp.where(y >= 0.0, y, 0.1 * y)
    bn = (feat - params["bn2_mean"]) / jnp.sqrt(params["bn2_var"] + eps) \
        * params["bn2_gamma"] + params["bn2_beta"]
    logits = bn @ params["cls_w"].T + params["cls_b"]
    return feat, bn, logits


if __name__ == "__main__":
    # Small shapes consistent with the module.
    N, C, H, W = 2, 8, 16, 16
    num_reduction = 128
    num_classes = 16

    key = jax.random.PRNGKey(0)
    k_x, k_p = jax.random.split(key)
    x = jax.random.normal(k_x, (N, C, H, W), dtype=jnp.float32)
    params = init_params(k_p, C, num_classes, num_reduction)

    # Forced hw_tile=128 exercises the multi-step accumulation path (grid=(1, 2));
    # the second call uses the auto-chosen tiling.
    outs_tiled = pbn_modify_forward(x, params, hw_tile=128)
    outs_auto = pbn_modify_forward(x, params)
    jax.block_until_ready((outs_tiled, outs_auto))

    refs = reference_forward(x, params)
    for got in (outs_tiled, outs_auto):
        for g, r in zip(got, refs):
            assert g.shape == r.shape, (g.shape, r.shape)
            assert jnp.allclose(g, r, atol=1e-4, rtol=1e-4)

    print("KERNEL_OK")
</pallas_src>

<mosaic_0001>
module attributes {stable_mosaic.version = 11 : i64} {
  func.func @_pbn_kernel(%arg0: i32, %arg1: i32, %arg2: memref<2x8x128xf32, #tpu.memory_space<vmem>>, %arg3: memref<8x128xf32, #tpu.memory_space<vmem>>, %arg4: memref<1x128xf32, #tpu.memory_space<vmem>>, %arg5: memref<1x128xf32, #tpu.memory_space<vmem>>, %arg6: memref<1x128xf32, #tpu.memory_space<vmem>>, %arg7: memref<128x128xf32, #tpu.memory_space<vmem>>, %arg8: memref<1x128xf32, #tpu.memory_space<vmem>>, %arg9: memref<2x128xf32, #tpu.memory_space<vmem>>, %arg10: memref<2x128xf32, #tpu.memory_space<vmem>>, %arg11: memref<2x128xf32, #tpu.memory_space<vmem>>, %arg12: memref<2x8xf32, #tpu.memory_space<vmem>>, %arg13: memref<2x8xf32, #tpu.memory_space<vmem>>) attributes {dimension_semantics = [#tpu.dimension_semantics<parallel>, #tpu.dimension_semantics<arbitrary>], iteration_bounds = array<i64: 1, 2>, scalar_prefetch = 0 : i64, scratch_operands = 2 : i64, tpu.core_type = #tpu.core_type<tc>, window_params = [{transform_indices = @transform_0, window_bounds = array<i64: 2, 8, 128>}, {pipeline_mode = #tpu.pipeline_mode<synchronous>, transform_indices = @transform_1, window_bounds = array<i64: 8, 128>}, {pipeline_mode = #tpu.pipeline_mode<synchronous>, transform_indices = @transform_2, window_bounds = array<i64: 1, 128>}, {pipeline_mode = #tpu.pipeline_mode<synchronous>, transform_indices = @transform_3, window_bounds = array<i64: 1, 128>}, {pipeline_mode = #tpu.pipeline_mode<synchronous>, transform_indices = @transform_4, window_bounds = array<i64: 1, 128>}, {pipeline_mode = #tpu.pipeline_mode<synchronous>, transform_indices = @transform_5, window_bounds = array<i64: 128, 128>}, {pipeline_mode = #tpu.pipeline_mode<synchronous>, transform_indices = @transform_6, window_bounds = array<i64: 1, 128>}, {transform_indices = @transform_7, window_bounds = array<i64: 2, 128>}, {transform_indices = @transform_8, window_bounds = array<i64: 2, 128>}, {transform_indices = @transform_9, window_bounds = array<i64: 2, 128>}]} {
    %c0 = arith.constant 0 : index
    %c0_0 = arith.constant 0 : index
    %c0_1 = arith.constant 0 : index
    %0 = vector.load %arg2[%c0, %c0_0, %c0_1] : memref<2x8x128xf32, #tpu.memory_space<vmem>>, vector<2x8x128xf32>
    %cst = arith.constant dense<0.000000e+00> : vector<2x8xf32>
    %1 = vector.multi_reduction <add>, %0, %cst [2] : vector<2x8x128xf32> to vector<2x8xf32>
    %cst_2 = arith.constant dense<0xFF800000> : vector<2x8xf32>
    %2 = vector.multi_reduction <maximumf>, %0, %cst_2 [2] : vector<2x8x128xf32> to vector<2x8xf32>
    %c0_i32 = arith.constant 0 : i32
    %3 = arith.cmpi eq, %arg1, %c0_i32 : i32
    %4 = arith.extui %3 : i1 to i32
    %c0_i32_3 = arith.constant 0 : i32
    %5 = arith.cmpi ne, %4, %c0_i32_3 : i32
    scf.if %5 {
      %c0_7 = arith.constant 0 : index
      %c0_8 = arith.constant 0 : index
      %12 = vector.load %arg12[%c0_7, %c0_8] : memref<2x8xf32, #tpu.memory_space<vmem>>, vector<2x8xf32>
      tpu.vector_store %arg12[%c0_7, %c0_8], %1 {strides = array<i32>} : memref<2x8xf32, #tpu.memory_space<vmem>>, vector<2x8xf32>,
      %c0_9 = arith.constant 0 : index
      %c0_10 = arith.constant 0 : index
      %13 = vector.load %arg13[%c0_9, %c0_10] : memref<2x8xf32, #tpu.memory_space<vmem>>, vector<2x8xf32>
      tpu.vector_store %arg13[%c0_9, %c0_10], %2 {strides = array<i32>} : memref<2x8xf32, #tpu.memory_space<vmem>>, vector<2x8xf32>,
    } else {
    }
    %c0_i32_4 = arith.constant 0 : i32
    %6 = arith.cmpi sgt, %arg1, %c0_i32_4 : i32
    %7 = arith.extui %6 : i1 to i32
    %c0_i32_5 = arith.constant 0 : i32
    %8 = arith.cmpi ne, %7, %c0_i32_5 : i32
    scf.if %8 {
      %c0_7 = arith.constant 0 : index
      %c0_8 = arith.constant 0 : index
      %12 = vector.load %arg12[%c0_7, %c0_8] : memref<2x8xf32, #tpu.memory_space<vmem>>, vector<2x8xf32>
      %13 = arith.addf %12, %1 : vector<2x8xf32>
      %c0_9 = arith.constant 0 : index
      %c0_10 = arith.constant 0 : index
      %14 = vector.load %arg12[%c0_9, %c0_10] : memref<2x8xf32, #tpu.memory_space<vmem>>, vector<2x8xf32>
      tpu.vector_store %arg12[%c0_9, %c0_10], %13 {strides = array<i32>} : memref<2x8xf32, #tpu.memory_space<vmem>>, vector<2x8xf32>,
      %c0_11 = arith.constant 0 : index
      %c0_12 = arith.constant 0 : index
      %15 = vector.load %arg13[%c0_11, %c0_12] : memref<2x8xf32, #tpu.memory_space<vmem>>, vector<2x8xf32>
      %16 = arith.maximumf %15, %2 : vector<2x8xf32>
      %c0_13 = arith.constant 0 : index
      %c0_14 = arith.constant 0 : index
      %17 = vector.load %arg13[%c0_13, %c0_14] : memref<2x8xf32, #tpu.memory_space<vmem>>, vector<2x8xf32>
      tpu.vector_store %arg13[%c0_13, %c0_14], %16 {strides = array<i32>} : memref<2x8xf32, #tpu.memory_space<vmem>>, vector<2x8xf32>,
    } else {
    }
    %c1_i32 = arith.constant 1 : i32
    %9 = arith.cmpi eq, %arg1, %c1_i32 : i32
    %10 = arith.extui %9 : i1 to i32
    %c0_i32_6 = arith.constant 0 : i32
    %11 = arith.cmpi ne, %10, %c0_i32_6 : i32
    scf.if %11 {
      %c0_7 = arith.constant 0 : index
      %c0_8 = arith.constant 0 : index
      %12 = vector.load %arg12[%c0_7, %c0_8] : memref<2x8xf32, #tpu.memory_space<vmem>>, vector<2x8xf32>
      %cst_9 = arith.constant 3.906250e-03 : f32
      %13 = vector.broadcast %cst_9 : f32 to vector<2x8xf32>
      %14 = arith.mulf %12, %13 : vector<2x8xf32>
      %c0_10 = arith.constant 0 : index
      %c0_11 = arith.constant 0 : index
      %15 = vector.load %arg13[%c0_10, %c0_11] : memref<2x8xf32, #tpu.memory_space<vmem>>, vector<2x8xf32>
      %16 = arith.addf %14, %15 : vector<2x8xf32>
      %c0_12 = arith.constant 0 : index
      %c0_13 = arith.constant 0 : index
      %17 = vector.load %arg3[%c0_12, %c0_13] : memref<8x128xf32, #tpu.memory_space<vmem>>, vector<8x128xf32>
      %cst_14 = arith.constant dense<0.000000e+00> : vector<2x128xf32>
      %18 = tpu.matmul %16, %17, %cst_14 {dimension_numbers = #tpu.dot_dimension_numbers<[1], [0], [0], [1], [0, 0, 1, 1], [], []>} : vector<2x8xf32>, vector<8x128xf32>, vector<2x128xf32> -> vector<2x128xf32>
      %c0_15 = arith.constant 0 : index
      %c0_16 = arith.constant 0 : index
      %19 = vector.load %arg4[%c0_15, %c0_16] : memref<1x128xf32, #tpu.memory_space<vmem>>, vector<1x128xf32>
      %20 = vector.broadcast %19 : vector<1x128xf32> to vector<2x128xf32>
      %21 = arith.addf %18, %20 : vector<2x128xf32>
      %cst_17 = arith.constant 0.000000e+00 : f32
      %22 = vector.broadcast %cst_17 : f32 to vector<2x128xf32>
      %23 = arith.cmpf oge, %21, %22 : vector<2x128xf32>
      %cst_18 = arith.constant 1.000000e-01 : f32
      %24 = vector.broadcast %cst_18 : f32 to vector<2x128xf32>
      %25 = arith.mulf %24, %21 : vector<2x128xf32>
      %26 = arith.select %23, %21, %25 : vector<2x128xi1>, vector<2x128xf32>
      %c0_19 = arith.constant 0 : index
      %c0_20 = arith.constant 0 : index
      %27 = vector.load %arg9[%c0_19, %c0_20] : memref<2x128xf32, #tpu.memory_space<vmem>>, vector<2x128xf32>
      tpu.vector_store %arg9[%c0_19, %c0_20], %26 {strides = array<i32>} : memref<2x128xf32, #tpu.memory_space<vmem>>, vector<2x128xf32>,
      %c0_21 = arith.constant 0 : index
      %c0_22 = arith.constant 0 : index
      %28 = vector.load %arg5[%c0_21, %c0_22] : memref<1x128xf32, #tpu.memory_space<vmem>>, vector<1x128xf32>
      %29 = vector.broadcast %28 : vector<1x128xf32> to vector<2x128xf32>
      %30 = arith.mulf %26, %29 : vector<2x128xf32>
      %c0_23 = arith.constant 0 : index
      %c0_24 = arith.constant 0 : index
      %31 = vector.load %arg6[%c0_23, %c0_24] : memref<1x128xf32, #tpu.memory_space<vmem>>, vector<1x128xf32>
      %32 = vector.broadcast %31 : vector<1x128xf32> to vector<2x128xf32>
      %33 = arith.addf %30, %32 : vector<2x128xf32>
      %c0_25 = arith.constant 0 : index
      %c0_26 = arith.constant 0 : index
      %34 = vector.load %arg10[%c0_25, %c0_26] : memref<2x128xf32, #tpu.memory_space<vmem>>, vector<2x128xf32>
      tpu.vector_store %arg10[%c0_25, %c0_26], %33 {strides = array<i32>} : memref<2x128xf32, #tpu.memory_space<vmem>>, vector<2x128xf32>,
      %c0_27 = arith.constant 0 : index
      %c0_28 = arith.constant 0 : index
      %35 = vector.load %arg7[%c0_27, %c0_28] : memref<128x128xf32, #tpu.memory_space<vmem>>, vector<128x128xf32>
      %cst_29 = arith.constant dense<0.000000e+00> : vector<2x128xf32>
      %36 = tpu.matmul %33, %35, %cst_29 {dimension_numbers = #tpu.dot_dimension_numbers<[1], [0], [0], [1], [0, 0, 1, 1], [], []>} : vector<2x128xf32>, vector<128x128xf32>, vector<2x128xf32> -> vector<2x128xf32>
      %c0_30 = arith.constant 0 : index
      %c0_31 = arith.constant 0 : index
      %37 = vector.load %arg8[%c0_30, %c0_31] : memref<1x128xf32, #tpu.memory_space<vmem>>, vector<1x128xf32>
      %38 = vector.broadcast %37 : vector<1x128xf32> to vector<2x128xf32>
      %39 = arith.addf %36, %38 : vector<2x128xf32>
      %c0_32 = arith.constant 0 : index
      %c0_33 = arith.constant 0 : index
      %40 = vector.load %arg11[%c0_32, %c0_33] : memref<2x128xf32, #tpu.memory_space<vmem>>, vector<2x128xf32>
      tpu.vector_store %arg11[%c0_32, %c0_33], %39 {strides = array<i32>} : memref<2x128xf32, #tpu.memory_space<vmem>>, vector<2x128xf32>,
    } else {
    }
    return
  }
  func.func @transform_0(%arg0: i32, %arg1: i32) -> (i32, i32, i32) {
    %c0_i32 = arith.constant 0 : i32
    %c0_i32_0 = arith.constant 0 : i32
    return %arg0, %c0_i32, %arg1 : i32, i32, i32
  }
  func.func @transform_1(%arg0: i32, %arg1: i32) -> (i32, i32) {
    %c0_i32 = arith.constant 0 : i32
    %c0_i32_0 = arith.constant 0 : i32
    %c0_i32_1 = arith.constant 0 : i32
    return %c0_i32, %c0_i32_0 : i32, i32
  }
  func.func @transform_2(%arg0: i32, %arg1: i32) -> (i32, i32) {
    %c0_i32 = arith.constant 0 : i32
    %c0_i32_0 = arith.constant 0 : i32
    %c0_i32_1 = arith.constant 0 : i32
    return %c0_i32, %c0_i32_0 : i32, i32
  }
  func.func @transform_3(%arg0: i32, %arg1: i32) -> (i32, i32) {
    %c0_i32 = arith.constant 0 : i32
    %c0_i32_0 = arith.constant 0 : i32
    %c0_i32_1 = arith.constant 0 : i32
    return %c0_i32, %c0_i32_0 : i32, i32
  }
  func.func @transform_4(%arg0: i32, %arg1: i32) -> (i32, i32) {
    %c0_i32 = arith.constant 0 : i32
    %c0_i32_0 = arith.constant 0 : i32
    %c0_i32_1 = arith.constant 0 : i32
    return %c0_i32, %c0_i32_0 : i32, i32
  }
  func.func @transform_5(%arg0: i32, %arg1: i32) -> (i32, i32) {
    %c0_i32 = arith.constant 0 : i32
    %c0_i32_0 = arith.constant 0 : i32
    %c0_i32_1 = arith.constant 0 : i32
    return %c0_i32, %c0_i32_0 : i32, i32
  }
  func.func @transform_6(%arg0: i32, %arg1: i32) -> (i32, i32) {
    %c0_i32 = arith.constant 0 : i32
    %c0_i32_0 = arith.constant 0 : i32
    %c0_i32_1 = arith.constant 0 : i32
    return %c0_i32, %c0_i32_0 : i32, i32
  }
  func.func @transform_7(%arg0: i32, %arg1: i32) -> (i32, i32) {
    %c0_i32 = arith.constant 0 : i32
    %c0_i32_0 = arith.constant 0 : i32
    return %arg0, %c0_i32 : i32, i32
  }
  func.func @transform_8(%arg0: i32, %arg1: i32) -> (i32, i32) {
    %c0_i32 = arith.constant 0 : i32
    %c0_i32_0 = arith.constant 0 : i32
    return %arg0, %c0_i32 : i32, i32
  }
  func.func @transform_9(%arg0: i32, %arg1: i32) -> (i32, i32) {
    %c0_i32 = arith.constant 0 : i32
    %c0_i32_0 = arith.constant 0 : i32
    return %arg0, %c0_i32 : i32, i32
  }
}

</mosaic_0001>

<bundles_post_ra>
// kernel: tpu_custom_call.1
= control target key start
LH: loop header
LB: loop body
LE: loop exit
PB: predicated region body
PF: predicated region fallthrough
CT: control target
= control target key end

     0   :  { %s1285_s0 = inlined_call_operand.hbm [shape: f32[2,8,256], index: 0, kind: input, shape index: {}]   ;;  %s1286_s1 = inlined_call_operand.hbm [shape: f32[8,128], index: 1, kind: input, shape index: {}]   ;;  %s1287_s2 = inlined_call_operand.vmem [shape: f32[1,128], index: 2, kind: input, shape index: {}]   ;;  %s1288_s3 = inlined_call_operand.vmem [shape: f32[1,128], index: 3, kind: input, shape index: {}]   ;;  %s1289_s4 = inlined_call_operand.vmem [shape: f32[1,128], index: 4, kind: input, shape index: {}]   ;;  %s1290_s5 = inlined_call_operand.hbm [shape: f32[128,128], index: 5, kind: input, shape index: {}]   ;;  %s1291_s6 = inlined_call_operand.vmem [shape: f32[1,128], index: 6, kind: input, shape index: {}]   ;;  %s1292_s7 = inlined_call_operand.hbm [shape: f32[2,128], index: 7, kind: output, shape index: {0}]   ;;  %s1293_s8 = inlined_call_operand.hbm [shape: f32[2,128], index: 8, kind: output, shape index: {1}]   ;;  %s1294_s9 = inlined_call_operand.hbm [shape: f32[2,128], index: 9, kind: output, shape index: {2}]  }
   0x1   :  { %1296 = sst [smem:[#allocation18_spill]] %s1286_s1 }
   0x2   :  { %1297 = sst [smem:[#allocation19_spill]] %s1290_s5 }
   0x3   :  { %1298 = sst [smem:[#allocation20_spill]] %s1292_s7 }
   0x4   :  { %1299 = sst [smem:[#allocation21_spill]] %s1293_s8 }
   0x5   :  { %1300 = sst [smem:[#allocation22_spill]] %s1294_s9 }
   0x6   :  { %15 = vsyncpa [#allocation5], 0 }
   0x7   :  { %17 = vsyncpa [#allocation5 + $0x1], 0 }
   0x8   :  { %18 = vsyncpa [#allocation8], 0 }
   0x9   :  { %19 = vsyncpa [#allocation6], 0 }
   0xa   :  { %20 = vsyncpa [#allocation12], 0  ;;  %s1122_s30 = smov 0   ;;  %s1124_s10 = smov 0  }
   0xb   :  { %s1126_s11 = smov 0   ;;  %s1128_s12 = smov 0  }
   0xc   :  { %s1130_s13 = smov 0   ;;  %s1132_s14 = smov 0  }
   0xd LB: > { %s1295_s15 = sadd.s32 4294967295, %s1062_s14   ;;  %p54_p0 = scmp.ne.s32.totalorder %s1050_s11, %s1046_s10  ;;  %s1062_s14 = sphi %s1132_s14, %s26_s14   ;;  %s1058_s13 = sphi %s1130_s13, %s1318_s13   ;;  %s1054_s12 = sphi %s1128_s12, %s1317_s12   ;;  %s1050_s11 = sphi %s1126_s11, %s1316_s11   ;;  %s1046_s10 = sphi %s1124_s10, %s1315_s10   ;;  %s1042_s30 = sphi %s1122_s30, %s1314_s30  }
   0xe   : > { %p55_p1 = scmp.eq.s32.totalorder %s1062_s14, 0  ;;  %p60_p2 = scmp.ne.s32.totalorder %s1046_s10, %s1042_s30 }
   0xf   : > { %p1158_p3 = scmp.eq.s32.totalorder %s1295_s15, 0  ;;  %p700_p5 = scmp.ge.s32.totalorder %s1062_s14, 1 }
  0x10   : > { %p1162_p4 = por %p55_p1, %p54_p0  ;;  %p275_p7 = scmp.lt.s32.totalorder %s1062_s14, 3 }
  0x11   : > { %p1169_p6 = por %p1158_p3, %p60_p2  ;;  %s1304_s1 = sld [smem:[#allocation18_spill]] }
  0x12   : > { %p1177_p8 = pnand %p700_p5, %p275_p7  ;;  %s1064_s24 = smov [#allocation7]  }
  0x13   : > { %s289_s25 = sshll.u32 %s1064_s24, 4  ;;  %p757_p10 = scmp.lt.s32.totalorder %s1062_s14, 2  ;;  %s290_s25 = int_to_ptr.vmem [resolvable:$true] %s289_s25 }
  0x14   : > { %p744_p9 = pneg %p1177_p8  ;;  %s1306_s5 = sld [smem:[#allocation19_spill]] }
  0x15   : > { %p1191_p12 = pnand %p757_p10, %p1162_p4  ;;  %s1065_s30 = smov [#allocation9]  }
  0x16   : > { %p745_p11 = pnand %p744_p9, %p1158_p3  ;;  %s309_s20 = sshll.u32 %s1065_s30, 4  ;;  %s310_s20 = int_to_ptr.vmem [resolvable:$true] %s309_s20 }
  0x17   : > { %s287_s22 = sshll.u32 %s1304_s1, 4  ;;  %s1066_s21 = smov 128   ;;  %s288_s22 = int_to_ptr.hbm [resolvable:$true] %s287_s22 }
  0x18   : > { %747 = dma.hbm_to_vmem [thread:$0]  (!%p745_p11), %s288_s22, 128, %s290_s25, [#allocation8]  }
  0x19   : > { %s1067_s24 = smov 8   ;;  %s326_s15 = sand.u32 1, %s1050_s11  }
  0x1a   : > { %s307_s28 = sshll.u32 %s1306_s5, 4  ;;  %s35_s16 = sadd.s32 1, %s1058_s13  ;;  %s308_s28 = int_to_ptr.hbm [resolvable:$true] %s307_s28 }
  0x1b   : > { %750 = dma.hbm_to_vmem [thread:$0]  (!%p745_p11), %s308_s28, 2048, %s310_s20, [#allocation8], %s1066_s21, %s1066_s21, %s1067_s24  }
  0x1c   : > { %p36_p13 = scmp.ge.s32.totalorder %s35_s16, 2  ;;  %s704_s18 = sshll.u32 %s326_s15, 4 }
  0x1d   : > { %s705_s26 = sshll.u32 %s1058_s13, 3  ;;  %s330_s25 = scalar_lea.vmem [#allocation4], %s704_s18 }
  0x1e   : > { %s1320_s16 = smov (%p36_p13, %s35_s16), 0  ;;  %s337_s22 = scalar_lea.hbm %s1285_s0, %s705_s26 }
  0x1f   : > { %s340_s30 = sshll.u32 %s330_s25, 4  ;;  %s43_s5 = ssub.s32 %s1058_s13, %s1320_s16  ;;  %s341_s30 = int_to_ptr.vmem [resolvable:$true] %s340_s30 }
  0x20   : > { %s338_s9 = sshll.u32 %s337_s22, 4  ;;  %p45_p0 = scmp.eq.s32.totalorder %s43_s5, 0  ;;  %s339_s9 = int_to_ptr.hbm [resolvable:$true] %s338_s9 }
  0x21   : > { %s1308_s28 = sadd.s32 1, %s1050_s11  ;;  %s327_s7 = scalar_lea.sflag [#allocation5], %s326_s15 }
  0x22   : > { %s1208_s20 = scalar_select %p45_p0, %s1050_s11, %s1308_s28  }
  0x23   : > { %s1068_s8 = smov 256   ;;  %352 = sbr.rel (%p1177_p8) target bundleno = 488 (0x1e8), region = 48 }
  0x24   : > { %754 = dma.hbm_to_vmem [thread:$0]  (!%p1191_p12), %s339_s9, 256, %s341_s30, %s327_s7, %s1068_s8, %s1066_s21, %s1067_s24  }
  0x25   : > { %s354_s1 = sand.u32 (!%p1177_p8), 1, %s1046_s10  }
  0x26   : > { %s707_s18 = sshll.u32 (!%p1177_p8), %s354_s1, 4  ;;  %s355_s26 = scalar_lea.sflag (!%p1177_p8), [#allocation5], %s354_s1 }
  0x27   : > { %s358_s27 = scalar_lea.vmem (!%p1177_p8), [#allocation4], %s707_s18 }
  0x28   : > { %1025 = dma.done.wait (%p1169_p6), %s355_s26, 256  }
  0x29   : > { %1027 = vsyncadd (%p1169_p6), %s355_s26, 4294967040 }
  0x2a   : > { %1029 = dma.done.wait (%p1158_p3), [#allocation8], 2176  }
  0x2b   : > { %1031 = vsyncadd (%p1158_p3), [#allocation8], 4294965120  ;;  %v400_v0 = vld [vmem:[%s358_s27] sm:$0xff]  ;;  %v401_v1 = vld [vmem:[%s358_s27 + $0x8] sm:$0xff]  ;;  %p710_p1 = scmp.ne.s32.totalorder %s1054_s12, 0 }
  0x2c   : > { %406 = vmax.xlane.f32.xlu1 %v400_v0  ;;  %402 = vadd.xlane.f32.xlu0 %v400_v0 }
  0x34   : > { %408 = vmax.xlane.f32.xlu1 %v401_v1  ;;  %404 = vadd.xlane.f32.xlu0 %v401_v1 }
  0x9f   : > { %v407_v2 = vpop.xlane.xlu1 %406  ;;  %v403_v3 = vpop.xlane.xlu0 %402 }
  0xa3   : > { %413 = sbr.rel (%p710_p1) target bundleno = 177 (0xb1), region = 64 }
  0xa7   : > { %v409_v4 = vpop.xlane.xlu1 %408  ;;  %v405_v5 = vpop.xlane.xlu0 %404 }
  0xa8   : > { %v416_v6 = vlaneseq  ;;  %vm420_vm0 = vcmask 1041409   ;;  %vm423_vm1 = vcmask 58368  }
  0xaa   : > { %v417_v7 = vand.u32 127, %v416_v6 }
  0xac   : > { %v418_v8 = vperm.slane %v403_v3, %v417_v7  ;;  %v419_v9 = vperm.slane %v405_v5, %v417_v7  ;;  %v427_v10 = vperm.slane %v407_v2, %v417_v7  ;;  %v428_v11 = vperm.slane %v409_v4, %v417_v7 }
  0xae   : > { %v421_v12 = vsel %vm420_vm0, %v419_v9, %v418_v8  ;;  %v429_v13 = vsel %vm420_vm0, %v428_v11, %v427_v10 }
  0xaf   : > { %424 = vst.msk [vmem:[#allocation2] sm:$0x3] %vm423_vm1, %v421_v12 }
  0xb0   : > { %431 = vst.msk [vmem:[#allocation3] sm:$0x3] %vm423_vm1, %v429_v13 }
  0xb1 PF: > { %p711_p2 = scmp.le.s32.totalorder %s1054_s12, 0 }
  0xb3   : > { %435 = sbr.rel (%p711_p2) target bundleno = 195 (0xc3), region = 68 }
  0xb8   : > { %v439_v14 = vlaneseq  ;;  %vm443_vm2 = vcmask 1041409   ;;  %v436_v16 = vld [vmem:[#allocation2] sm:$0x3]  ;;  %v449_v19 = vld [vmem:[#allocation3] sm:$0x3]  ;;  %vm447_vm3 = vcmask 58368  }
  0xba   : > { %v440_v15 = vand.u32 127, %v439_v14 }
  0xbc   : > { %v441_v17 = vperm.slane %v403_v3, %v440_v15  ;;  %v442_v18 = vperm.slane %v405_v5, %v440_v15  ;;  %v452_v20 = vperm.slane %v407_v2, %v440_v15  ;;  %v453_v21 = vperm.slane %v409_v4, %v440_v15 }
  0xbe   : > { %v444_v22 = vsel %vm443_vm2, %v442_v18, %v441_v17  ;;  %v454_v23 = vsel %vm443_vm2, %v453_v21, %v452_v20 }
  0xbf   : > { %v446_v24 = vadd.f32 %v444_v22, %v436_v16  ;;  %v456_v25 = vmax.f32 %v449_v19, %v454_v23 }
  0xc1   : > { %448 = vst.msk [vmem:[#allocation2] sm:$0x3] %vm447_vm3, %v446_v24 }
  0xc2   : > { %457 = vst.msk [vmem:[#allocation3] sm:$0x3] %vm447_vm3, %v456_v25 }
  0xc3 PF: > { %p712_p3 = scmp.ne.s32.totalorder %s1054_s12, 1 }
  0xc5   : > { %461 = sbr.rel (%p712_p3) target bundleno = 471 (0x1d7), region = 72 }
  0xca   : > { %v466_v26 = vld [vmem:[#allocation7] sm:$0xff]  ;;  %v462_v27 = vld [vmem:[#allocation2] sm:$0x3]  ;;  %v464_v28 = vld [vmem:[#allocation3] sm:$0x3]  ;;  %vm471_vm4 = vcmask 64512  }
  0xcb   : > { %490 = vmatpush.msra.mxu0 %v466_v26  ;;  %v463_v29 = vmul.f32 0.00390625, %v462_v27  ;;  %v525_v30 = vld [vmem:[#allocation9 + $0x78] sm:$0xff]  ;;  %v524_v31 = vld [vmem:[#allocation9 + $0x70] sm:$0xff]  ;;  %v523_v33 = vld [vmem:[#allocation9 + $0x68] sm:$0xff] }
  0xcc   : > { %530 = vmatpush.msra.mxu1 %v525_v30  ;;  %v522_v34 = vld [vmem:[#allocation9 + $0x60] sm:$0xff]  ;;  %v521_v35 = vld [vmem:[#allocation9 + $0x58] sm:$0xff]  ;;  %v520_v36 = vld [vmem:[#allocation9 + $0x50] sm:$0xff] }
  0xcd   : > { %v465_v32 = vadd.f32 %v464_v28, %v463_v29  ;;  %v519_v37 = vld [vmem:[#allocation9 + $0x48] sm:$0xff]  ;;  %v518_v38 = vld [vmem:[#allocation9 + $0x40] sm:$0xff]  ;;  %v517_v39 = vld [vmem:[#allocation9 + $0x38] sm:$0xff] }
  0xce   : > { %531 = vmatpush.msra.mxu1 %v524_v31  ;;  %v516_v40 = vld [vmem:[#allocation9 + $0x30] sm:$0xff]  ;;  %v515_v41 = vld [vmem:[#allocation9 + $0x28] sm:$0xff]  ;;  %v514_v42 = vld [vmem:[#allocation9 + $0x20] sm:$0xff] }
  0xcf   : > { %713 = vmatmul.msk.f32.vlgmr.msra.gmra.mxu0 %vm471_vm4, %v465_v32  ;;  %v513_v43 = vld [vmem:[#allocation9 + $0x18] sm:$0xff]  ;;  %v512_v44 = vld [vmem:[#allocation9 + $0x10] sm:$0xff]  ;;  %v511_v45 = vld [vmem:[#allocation9 + $0x8] sm:$0xff] }
  0xd0   : > { %532 = vmatpush.msra.mxu1 %v523_v33  ;;  %v510_v46 = vld [vmem:[#allocation9] sm:$0xff]  ;;  %v822_v47 = vld [vmem:[%s1287_s2] ss:$0 sm:$0xff] }
  0xd1   : > { %v823_v50 = vld [vmem:[%s1288_s3] ss:$0 sm:$0xff] }
  0xd2   : > { %533 = vmatpush.msra.mxu1 %v522_v34  ;;  %v824_v52 = vld [vmem:[%s1289_s4] ss:$0 sm:$0xff] }
  0xd3   : > { %v825_v56 = vld [vmem:[%s1291_s6] ss:$0 sm:$0xff] }
  0xd4   : > { %534 = vmatpush.msra.mxu1 %v521_v35 }
  0xd6   : > { %535 = vmatpush.msra.mxu1 %v520_v36 }
  0xd8   : > { %536 = vmatpush.msra.mxu1 %v519_v37 }
  0xda   : > { %537 = vmatpush.msra.mxu1 %v518_v38 }
  0xdc   : > { %538 = vmatpush.msra.mxu1 %v517_v39 }
  0xde   : > { %539 = vmatpush.msra.mxu1 %v516_v40 }
  0xe0   : > { %540 = vmatpush.msra.mxu1 %v515_v41 }
  0xe2   : > { %541 = vmatpush.msra.mxu1 %v514_v42 }
  0xe4   : > { %542 = vmatpush.msra.mxu1 %v513_v43 }
  0xe6   : > { %543 = vmatpush.msra.mxu1 %v512_v44 }
  0xe8   : > { %544 = vmatpush.msra.mxu1 %v511_v45 }
  0xea   : > { %545 = vmatpush.msra.mxu1 %v510_v46 }
 0x14c   : > { %v492_v48 = vpop.f32.mrf.mxu0 }
 0x14d   : > { %v493_v49 = vadd.f32 %v822_v47, %v492_v48 }
 0x14f   : > { %vm495_vm5 = vcmp.ge.f32.partialorder %v493_v49, 0.0  ;;  %v496_v51 = vmul.f32 0.1, %v493_v49 }
 0x151   : > { %v497_v53 = vsel %vm495_vm5, %v493_v49, %v496_v51 }
 0x152   : > { %498 = vst [vmem:[#allocation10] sm:$0x3] %v497_v53  ;;  %v503_v54 = vmul.f32 %v823_v50, %v497_v53 }
 0x154   : > { %v508_v55 = vadd.f32 %v824_v52, %v503_v54 }
 0x156   : > { %509 = vst [vmem:[#allocation11] sm:$0x3] %v508_v55  ;;  %546 = vmatmul.f32.vlgmr.msra.gmra.mxu1 %v508_v55 }
 0x1d3   : > { %v547_v57 = vpop.f32.mrf.mxu1 }
 0x1d4   : > { %v548_v58 = vadd.f32 %v825_v56, %v547_v57 }
 0x1d6   : > { %550 = vst [vmem:[#allocation13] sm:$0x3] %v548_v58 }
 0x1d7 PF: > { %s1309_s23 = sadd.s32 4294967295, %s1062_s14   ;;  %s1069_s21 = smov [#allocation11]  }
 0x1d8   : > { %p1240_p4 = scmp.eq.s32.totalorder %s1309_s23, 1  ;;  %s573_s24 = sshll.u32 %s1069_s21, 4  ;;  %s574_s24 = int_to_ptr.vmem [resolvable:$true] %s573_s24 }
 0x1d9   : > { %s1311_s30 = sld [smem:[#allocation21_spill]]  ;;  %s1070_s1 = smov [#allocation10]  }
 0x1da   : > { %s559_s18 = sshll.u32 %s1070_s1, 4  ;;  %s1312_s5 = sld [smem:[#allocation20_spill]]  ;;  %s560_s18 = int_to_ptr.vmem [resolvable:$true] %s559_s18 }
 0x1db   : > { %s1313_s12 = sld [smem:[#allocation22_spill]]  ;;  %s1071_s17 = smov [#allocation13]  }
 0x1dc   : > { %s587_s19 = sshll.u32 %s1071_s17, 4  ;;  %s588_s19 = int_to_ptr.vmem [resolvable:$true] %s587_s19 }
 0x1df   : > { %s575_s28 = sshll.u32 %s1311_s30, 4  ;;  %s576_s28 = int_to_ptr.hbm [resolvable:$true] %s575_s28 }
 0x1e0   : > { %735 = dma.vmem_to_hbm [thread:$0]  (%p1240_p4), %s574_s24, 32, %s576_s28, [#allocation12]  }
 0x1e1   : > { %s561_s7 = sshll.u32 %s1312_s5, 4  ;;  %s589_s15 = sshll.u32 %s1313_s12, 4  ;;  %s562_s7 = int_to_ptr.hbm [resolvable:$true] %s561_s7  ;;  %s590_s15 = int_to_ptr.hbm [resolvable:$true] %s589_s15 }
 0x1e2   : > { %733 = dma.vmem_to_hbm [thread:$0]  (%p1240_p4), %s560_s18, 32, %s562_s7, [#allocation6]  }
 0x1e3   : > { %737 = dma.vmem_to_hbm [thread:$0]  (%p1240_p4), %s588_s19, 32, %s590_s15, [#allocation12]  }
 0x1e4   : > { %1033 = dma.done.wait (%p1240_p4), [#allocation6], 32  }
 0x1e5   : > { %1035 = vsyncadd (%p1240_p4), [#allocation6], 4294967264 }
 0x1e6   : > { %1037 = dma.done.wait (%p1240_p4), [#allocation12], 64  }
 0x1e7   : > { %1039 = vsyncadd (%p1240_p4), [#allocation12], 4294967232 }
 0x1e8 PF: > { %s26_s14 = sadd.s32 1, %s1062_s14   ;;  %s1314_s30 = smov %s1046_s10 }
 0x1e9   : > { %p23_p5 = scmp.ge.s32.totalorder %s26_s14, 4   ;;  %s1315_s10 = smov %s1050_s11 }
 0x1ea   : > { %s1316_s11 = smov %s1208_s20  ;;  %s1317_s12 = smov %s1058_s13 }
 0x1eb   : > { %s1318_s13 = smov %s1320_s16  ;;  %25 = sbr.rel (!%p23_p5) target bundleno = 13 (0xd), region = 124 }
 0x1f0   :  { %613 = vsyncpa [#allocation5], 1 }
 0x1f1   :  { %615 = vsyncpa [#allocation5 + $0x1], 1 }
 0x1f2   :  { %616 = vsyncpa [#allocation8], 1 }
 0x1f3   :  { %617 = vsyncpa [#allocation6], 1 }
 0x1f4   :  { %619 = vsyncpa [#allocation6 + $0x1], 1 }
 0x1f5   :  { %620 = vsyncpa [#allocation12], 1 }

</bundles_post_ra>
